<compile_context>
chip_gen: v6e
topology: v6e:2x2x1
jax: 0.10.0
libtpu: 0.0.40
codegen_flags: <defaults>
</compile_context>

<pallas_src>
import jax
import jax.numpy as jnp
from jax.experimental import pallas as pl
from jax.experimental.pallas import tpu as pltpu


def _fuse_kernel(h2d_ref, h3d_ref, w_ref, b_ref, out_ref):
    """Plain path. h2d/h3d tiles: [TB, E]; w_ref: [2, E] f32 (rows = w1, w2); b_ref: (1,) SMEM."""
    h2d = h2d_ref[...]
    h3d = h3d_ref[...]
    w = w_ref[...].astype(jnp.float32)
    # Single fused reduction (one cross-lane XLU reduce per tile); score in f32.
    prod = h2d.astype(jnp.float32) * w[0:1, :] + h3d.astype(jnp.float32) * w[1:2, :]
    score = jnp.sum(prod, axis=-1, keepdims=True) + b_ref[0]          # [TB, 1]
    a = jax.nn.sigmoid(score).astype(h2d.dtype)                        # [TB, 1]
    # TODO(synk): torch prints attention_weights here (pure side effect; omitted).
    # One-FMA lerp == a*h2d + (1-a)*h3d up to rounding; blend stays in input dtype.
    out_ref[...] = (h3d + a * (h2d - h3d)).astype(out_ref.dtype)


def _fuse_packed_kernel(h2d_ref, h3d_ref, w_ref, seg_ref, b_ref, out_ref):
    """Lane-packed path for E < 128 (k = 128 // E original rows per 128-lane row).

    h2d/h3d tiles: [TB, 128]; w_ref: [2, 128] f32 (w1, w2 each tiled k times along
    lanes); seg_ref: [128, 128] f32 block-diagonal ones -- one MXU matmul performs the
    per-segment (per original row) sum and broadcasts it back over that segment's E
    lanes, keeping every load/compute/store lane-dense.
    """
    h2d = h2d_ref[...]
    h3d = h3d_ref[...]
    w = w_ref[...].astype(jnp.float32)
    prod = h2d.astype(jnp.float32) * w[0:1, :] + h3d.astype(jnp.float32) * w[1:2, :]
    score = jnp.dot(prod, seg_ref[...],
                    preferred_element_type=jnp.float32,
                    precision=jax.lax.Precision.HIGHEST) + b_ref[0]    # [TB, 128]
    a = jax.nn.sigmoid(score).astype(h2d.dtype)
    out_ref[...] = (h3d + a * (h2d - h3d)).astype(out_ref.dtype)


def _pick_batch_tile(rows, row_bytes, target_tile_bytes=2 << 20, min_grid=4):
    """Rows per tile: target ~2 MiB per input tile (>=85% of HBM roofline in measured
    f32-add data), but keep >= min_grid grid steps when the batch allows it so both
    v7x TensorCores get work and each still double-buffers."""
    tb = max(8, target_tile_bytes // max(1, row_bytes))
    if rows >= min_grid * 8:
        tb = min(tb, rows // min_grid)
    else:
        tb = min(tb, rows)
    return max(8, (int(tb) // 8) * 8)


def attention_module_forward(h_2d, h_3d, weight, bias, batch_tile=None):
    """h_2d, h_3d: [B, E]; weight: [1, 2E]; bias: [1] -> [B, E] (or [B] if E == 1)."""
    B, E = h_2d.shape
    assert h_3d.shape == (B, E)
    assert weight.shape == (1, 2 * E)

    # Split the Linear(2E, 1) weight outside the kernel (no non-128-aligned lane slices
    # per grid step); both halves travel as one small resident [2, lanes] operand.
    w1 = weight[:, :E].astype(jnp.float32)
    w2 = weight[:, E:].astype(jnp.float32)
    bias_1d = jnp.reshape(bias, (1,)).astype(jnp.float32)

    k = (128 // E) if (0 < E < 128 and 128 % E == 0) else 1
    use_packed = k > 1 and B % k == 0 and B >= k

    if use_packed:
        # Free row-major reshape in HBM: k consecutive rows share one 128-lane row.
        rows, lanes = B // k, 128
        h2 = jnp.reshape(h_2d, (rows, lanes))
        h3 = jnp.reshape(h_3d, (rows, lanes))
        w = jnp.concatenate([jnp.tile(w1, (1, k)), jnp.tile(w2, (1, k))], axis=0)
        seg = jnp.kron(jnp.eye(k, dtype=jnp.float32),
                       jnp.ones((E, E), dtype=jnp.float32))            # [128, 128]
        kernel = _fuse_packed_kernel
        extra_inputs = (seg,)
        extra_specs = (pl.BlockSpec((lanes, lanes), lambda i: (0, 0)),)
    else:
        rows, lanes = B, E
        h2, h3 = h_2d, h_3d
        w = jnp.concatenate([w1, w2], axis=0)                          # [2, E]
        kernel = _fuse_kernel
        extra_inputs = ()
        extra_specs = ()

    itemsize = jnp.dtype(h_2d.dtype).itemsize
    row_bytes = lanes * itemsize
    if batch_tile is None:
        tb = _pick_batch_tile(rows, row_bytes)
    else:
        tb = max(8, (int(batch_tile) // 8) * 8)
    grid = ((rows + tb - 1) // tb,)   # ragged last block: Pallas masks OOB writes

    # Explicit scoped-VMEM limit: 3 double-buffered [tb, lanes] tiles + resident
    # operands + headroom; keeps the intended tile size on every generation.
    tile_bytes = tb * row_bytes
    resident_bytes = 4 * (w.size + sum(x.size for x in extra_inputs))
    vmem_limit = int(max(16 << 20,
                         min(32 << 20, 6 * tile_bytes + resident_bytes + (4 << 20))))

    out = pl.pallas_call(
        kernel,
        out_shape=jax.ShapeDtypeStruct((rows, lanes), h_2d.dtype),
        grid=grid,
        in_specs=[
            pl.BlockSpec((tb, lanes), lambda i: (i, 0)),            # h_2d tile
            pl.BlockSpec((tb, lanes), lambda i: (i, 0)),            # h_3d tile
            pl.BlockSpec((2, lanes), lambda i: (0, 0)),             # [w1; w2] (resident)
            *extra_specs,                                           # seg matrix (packed path)
            pl.BlockSpec(memory_space=pltpu.MemorySpace.SMEM),      # bias (1,) scalar
        ],
        out_specs=pl.BlockSpec((tb, lanes), lambda i: (i, 0)),
        compiler_params=pltpu.CompilerParams(
            dimension_semantics=("parallel",),
            vmem_limit_bytes=vmem_limit,
        ),
    )(h2, h3, w, *extra_inputs, bias_1d)

    if use_packed:
        out = jnp.reshape(out, (B, E))
    if E == 1:
        out = jnp.squeeze(out, axis=-1)   # torch .squeeze(-1) only changes shape for E == 1
    return out


def _reference(h_2d, h_3d, weight, bias):
    combined = jnp.concatenate([h_2d, h_3d], axis=-1)
    scores = jnp.sum(combined * weight, axis=-1, keepdims=True) + bias
    a = jax.nn.sigmoid(scores)
    out = a * h_2d + (1.0 - a) * h_3d
    if h_2d.shape[-1] == 1:
        out = jnp.squeeze(out, axis=-1)
    return out


def _make_case(key, B, E):
    k1, k2, k3, k4 = jax.random.split(key, 4)
    h_2d = jax.random.normal(k1, (B, E), dtype=jnp.float32)
    h_3d = jax.random.normal(k2, (B, E), dtype=jnp.float32)
    bound = (2.0 * E) ** -0.5
    weight = jax.random.uniform(k3, (1, 2 * E), jnp.float32, -bound, bound)
    bias = jax.random.uniform(k4, (1,), jnp.float32, -bound, bound)
    return h_2d, h_3d, weight, bias


if __name__ == "__main__":
    key = jax.random.PRNGKey(0)
    cases = [
        (256, 128),   # lane-dense E, 4-step parallel grid (plain path)
        (32, 32),     # E = 32 -> lane-packed path (k = 4 rows per 128-lane row)
        (10, 32),     # ragged batch, B % k != 0 -> plain path + masked last block
        (1024, 1),    # E = 1 -> packed path + torch .squeeze(-1) shape
    ]
    for B, E in cases:
        key, sub = jax.random.split(key)
        h_2d, h_3d, weight, bias = _make_case(sub, B, E)
        out = jax.block_until_ready(attention_module_forward(h_2d, h_3d, weight, bias))
        ref = _reference(h_2d, h_3d, weight, bias)
        assert out.shape == ref.shape, (out.shape, ref.shape)
        err = float(jnp.max(jnp.abs(out - ref)))
        assert jnp.allclose(out, ref, atol=1e-5, rtol=1e-5), (B, E, err)
    print("KERNEL_OK")
</pallas_src>

<mosaic_0001>
module attributes {stable_mosaic.version = 11 : i64} {
  func.func @_fuse_kernel(%arg0: i32, %arg1: memref<64x128xf32, #tpu.memory_space<vmem>>, %arg2: memref<64x128xf32, #tpu.memory_space<vmem>>, %arg3: memref<2x128xf32, #tpu.memory_space<vmem>>, %arg4: memref<1xf32, #tpu.memory_space<smem>>, %arg5: memref<64x128xf32, #tpu.memory_space<vmem>>) attributes {dimension_semantics = [#tpu.dimension_semantics<parallel>], iteration_bounds = array<i64: 4>, scalar_prefetch = 0 : i64, scratch_operands = 0 : i64, tpu.core_type = #tpu.core_type<tc>, window_params = [{transform_indices = @transform_0, window_bounds = array<i64: 64, 128>}, {transform_indices = @transform_1, window_bounds = array<i64: 64, 128>}, {pipeline_mode = #tpu.pipeline_mode<synchronous>, transform_indices = @transform_2, window_bounds = array<i64: 2, 128>}, {transform_indices = @transform_3, window_bounds = array<i64: 1>}, {transform_indices = @transform_4, window_bounds = array<i64: 64, 128>}]} {
    %c0 = arith.constant 0 : index
    %c0_0 = arith.constant 0 : index
    %0 = vector.load %arg1[%c0, %c0_0] : memref<64x128xf32, #tpu.memory_space<vmem>>, vector<64x128xf32>
    %c0_1 = arith.constant 0 : index
    %c0_2 = arith.constant 0 : index
    %1 = vector.load %arg2[%c0_1, %c0_2] : memref<64x128xf32, #tpu.memory_space<vmem>>, vector<64x128xf32>
    %c0_3 = arith.constant 0 : index
    %c0_4 = arith.constant 0 : index
    %2 = vector.load %arg3[%c0_3, %c0_4] : memref<2x128xf32, #tpu.memory_space<vmem>>, vector<2x128xf32>
    %3 = vector.extract_strided_slice %2 {offsets = [0, 0], sizes = [1, 128], strides = [1, 1]} : vector<2x128xf32> to vector<1x128xf32>
    %4 = vector.broadcast %3 : vector<1x128xf32> to vector<64x128xf32>
    %5 = arith.mulf %0, %4 : vector<64x128xf32>
    %6 = vector.extract_strided_slice %2 {offsets = [1, 0], sizes = [1, 128], strides = [1, 1]} : vector<2x128xf32> to vector<1x128xf32>
    %7 = vector.broadcast %6 : vector<1x128xf32> to vector<64x128xf32>
    %8 = arith.mulf %1, %7 : vector<64x128xf32>
    %9 = arith.addf %5, %8 : vector<64x128xf32>
    %cst = arith.constant dense<0.000000e+00> : vector<64xf32>
    %10 = vector.multi_reduction <add>, %9, %cst [1] : vector<64x128xf32> to vector<64xf32>
    %11 = vector.shape_cast %10 : vector<64xf32> to vector<64x1xf32>
    %c0_5 = arith.constant 0 : index
    %12 = memref.load %arg4[%c0_5] : memref<1xf32, #tpu.memory_space<smem>>
    %13 = vector.broadcast %12 : f32 to vector<64x1xf32>
    %14 = arith.addf %11, %13 : vector<64x1xf32>
    %15 = arith.negf %14 : vector<64x1xf32>
    %16 = math.exp %15 : vector<64x1xf32>
    %cst_6 = arith.constant 1.000000e+00 : f32
    %17 = vector.broadcast %cst_6 : f32 to vector<64x1xf32>
    %18 = arith.addf %17, %16 : vector<64x1xf32>
    %19 = arith.divf %17, %18 : vector<64x1xf32>
    %20 = arith.subf %0, %1 : vector<64x128xf32>
    %21 = vector.broadcast %19 : vector<64x1xf32> to vector<64x128xf32>
    %22 = arith.mulf %21, %20 : vector<64x128xf32>
    %23 = arith.addf %1, %22 : vector<64x128xf32>
    %c0_7 = arith.constant 0 : index
    %c0_8 = arith.constant 0 : index
    %24 = vector.load %arg5[%c0_7, %c0_8] : memref<64x128xf32, #tpu.memory_space<vmem>>, vector<64x128xf32>
    tpu.vector_store %arg5[%c0_7, %c0_8], %23 {strides = array<i32>} : memref<64x128xf32, #tpu.memory_space<vmem>>, vector<64x128xf32>,
    return
  }
  func.func @transform_0(%arg0: i32) -> (i32, i32) {
    %c0_i32 = arith.constant 0 : i32
    %c0_i32_0 = arith.constant 0 : i32
    return %arg0, %c0_i32 : i32, i32
  }
  func.func @transform_1(%arg0: i32) -> (i32, i32) {
    %c0_i32 = arith.constant 0 : i32
    %c0_i32_0 = arith.constant 0 : i32
    return %arg0, %c0_i32 : i32, i32
  }
  func.func @transform_2(%arg0: i32) -> (i32, i32) {
    %c0_i32 = arith.constant 0 : i32
    %c0_i32_0 = arith.constant 0 : i32
    %c0_i32_1 = arith.constant 0 : i32
    return %c0_i32, %c0_i32_0 : i32, i32
  }
  func.func @transform_3(%arg0: i32) -> i32 {
    %c0_i32 = arith.constant 0 : i32
    %c0_i32_0 = arith.constant 0 : i32
    return %c0_i32 : i32
  }
  func.func @transform_4(%arg0: i32) -> (i32, i32) {
    %c0_i32 = arith.constant 0 : i32
    %c0_i32_0 = arith.constant 0 : i32
    return %arg0, %c0_i32 : i32, i32
  }
}

</mosaic_0001>

<bundles_post_ra>
// kernel: tpu_custom_call.1
= control target key start
LH: loop header
LB: loop body
LE: loop exit
PB: predicated region body
PF: predicated region fallthrough
CT: control target
= control target key end

     0   :  { %s1129_s0 = inlined_call_operand.hbm [shape: f32[256,128], index: 0, kind: input, shape index: {}]   ;;  %s1130_s1 = inlined_call_operand.hbm [shape: f32[256,128], index: 1, kind: input, shape index: {}]   ;;  %s1131_s2 = inlined_call_operand.vmem [shape: f32[2,128], index: 2, kind: input, shape index: {}]   ;;  %s1132_s3 = inlined_call_operand.<no memory space> [shape: f32[1], index: 3, kind: input, shape index: {}]   ;;  %s1133_s4 = inlined_call_operand.hbm [shape: f32[256,128], index: 4, kind: output, shape index: {}]  }
   0x1   :  { %9 = sst [smem:[#allocation2]] %s1132_s3 }
   0x2   :  { %10 = vsyncpa [#allocation4], 0 }
   0x3   :  { %12 = vsyncpa [#allocation4 + $0x1], 0 }
   0x4   :  { %13 = vsyncpa [#allocation7], 0 }
   0x5   :  { %15 = vsyncpa [#allocation7 + $0x1], 0 }
   0x6   :  { %16 = vsyncpa [#allocation5], 0 }
   0x7   :  { %18 = vsyncpa [#allocation5 + $0x1], 0  ;;  %s802_s17 = smov 0   ;;  %s804_s18 = smov 0  }
   0x8   :  { %s806_s19 = smov 0   ;;  %s808_s20 = smov 0  }
   0x9 LB: > { %s823_s3 = sadd.s32 4294967295, %s765_s20   ;;  %s525_s21 = sadd.s32 4294967294, %s765_s20   ;;  %s765_s20 = sphi %s808_s20, %s1148_s20   ;;  %s761_s19 = sphi %s806_s19, %s1147_s19   ;;  %s757_s18 = sphi %s804_s18, %s1146_s18   ;;  %s753_s17 = sphi %s802_s17, %s1145_s17  }
   0xa   : > { %s827_s22 = sadd.s32 1, %s765_s20   ;;  %s31_s23 = sadd.s32 1, %s761_s19 }
   0xb   : > { %s28_s24 = ssub.s32 %s765_s20, %s827_s22  ;;  %p38_p0 = scmp.ne.s32.totalorder %s761_s19, %s757_s18 }
   0xc   : > { %p29_p1 = scmp.eq.s32.totalorder %s28_s24, 0  ;;  %p39_p2 = scmp.eq.s32.totalorder %s765_s20, 0 }
   0xd   : > { %p44_p3 = scmp.ne.s32.totalorder %s757_s18, %s753_s17  ;;  %p45_p4 = scmp.eq.s32.totalorder %s823_s3, 0 }
   0xe   : > { %s839_s25 = scalar_select %p29_p1, %s761_s19, %s31_s23  }
   0xf   : > { %p841_p5 = por %p39_p2, %p38_p0  ;;  %p845_p6 = por %p45_p4, %p44_p3 }
  0x10   : > { %p136_p7 = scmp.eq.s32.totalorder %s823_s3, 3  ;;  %p142_p8 = scmp.eq.s32.totalorder %s525_s21, 3 }
  0x11   : > { %s1137_s27 = scalar_select %p845_p6, 1, 0 }
  0x12   : > { %p571_p9 = scmp.lt.s32.totalorder %s765_s20, 4  ;;  %p851_p10 = por %p136_p7, %p38_p0 }
  0x13   : > { %p855_p11 = por %p142_p8, %p44_p3  ;;  %s860_s30 = sand.u32 1, %s761_s19  }
  0x14   : > { %s1138_s28 = scalar_select %p851_p10, 1, 0 }
  0x15   : > { %s1139_s29 = scalar_select %p855_p11, 1, 0 }
  0x16   : > { %s551_s5 = sshll.u32 %s765_s20, 10  ;;  %s528_s6 = sshll.u32 %s860_s30, 6 }
  0x17   : > { %s869_s9 = scalar_lea.hbm %s1129_s0, %s551_s5  ;;  %s172_s10 = scalar_lea.vmem [#allocation3], %s528_s6 }
  0x18   : > { %s179_s11 = sshll.u32 %s172_s10, 4  ;;  %p875_p12 = pnand %p571_p9, %p841_p5  ;;  %s879_s11 = int_to_ptr.vmem [resolvable:$true] %s179_s11 }
  0x19   : > { %s169_s13 = scalar_lea.sflag [#allocation4], %s860_s30  ;;  %s641_s14 = scalar_lea.hbm %s869_s9, 1024 }
  0x1a   : > { %p642_p13 = scmp.ne.s32.totalorder %s869_s9, %s641_s14  ;;  %p643_p0 = pneg %p875_p12 }
  0x1b   : > { %s646_s21 = scalar_lea.hbm %s1129_s0, 4096  ;;  %p647_p3 = scmp.lt.s32.totalorder %s869_s9, %s1129_s0 }
  0x1c   : > { %p644_p1 = pnand %p643_p0, %p642_p13  ;;  %p648_p4 = scmp.lt.s32.totalorder %s646_s21, %s641_s14 }
  0x1e   : > { %p645_p2 = pneg %p644_p1  ;;  %p649_p5 = por %p648_p4, %p647_p3 }
  0x20   : > { %p650_p7 = pnand %p649_p5, %p645_p2 }
  0x22   : > { %653 = shalt.err (!%p650_p7)
}
  0x23   : > { %s654_s26 = scalar_lea.vmem %s879_s11, 1024  ;;  %s767_s7 = smov [#allocation3]  }
  0x24   : > { %p655_p8 = scmp.ne.s32.totalorder %s879_s11, %s654_s26  ;;  %s659_s8 = sshll.u32 %s767_s7, 4  ;;  %s660_s8 = int_to_ptr.vmem [resolvable:$false] %s659_s8 }
  0x25   : > { %s661_s10 = scalar_lea.vmem %s660_s8, 2048  ;;  %p662_p1 = scmp.lt.s32.totalorder %s879_s11, %s660_s8 }
  0x26   : > { %p657_p9 = pnand %p655_p8, %p643_p0  ;;  %p663_p11 = scmp.lt.s32.totalorder %s661_s10, %s654_s26 }
  0x28   : > { %p658_p13 = pneg %p657_p9  ;;  %p664_p10 = por %p663_p11, %p662_p1 }
  0x2a   : > { %p665_p3 = pnand %p664_p10, %p658_p13 }
  0x2c   : > { %668 = shalt.err (!%p665_p3)
}
  0x2d   : > { %s768_s14 = smov 128   ;;  %s769_s15 = smov 8  }
  0x2e   : > { %563 = dma.hbm_to_vmem [thread:$0]  (!%p875_p12), %s869_s9, 1024, %s879_s11, %s169_s13, %s768_s14, %s768_s14, %s769_s15  }
  0x2f   : > { %p534_p10 = scmp.ge.s32.totalorder %s765_s20, 1  ;;  %p208_p11 = scmp.lt.s32.totalorder %s765_s20, 5 }
  0x30   : > { %s922_s24 = scalar_lea.hbm %s1130_s1, %s551_s5  ;;  %s193_s26 = scalar_lea.vmem [#allocation6], %s528_s6 }
  0x31   : > { %p913_p2 = pnand %p534_p10, %p208_p11  ;;  %s200_s7 = sshll.u32 %s193_s26, 4  ;;  %s926_s7 = int_to_ptr.vmem [resolvable:$true] %s200_s7 }
  0x32   : > { %s190_s9 = scalar_lea.sflag [#allocation7], %s860_s30  ;;  %s669_s11 = scalar_lea.hbm %s922_s24, 1024 }
  0x33   : > { %p670_p4 = scmp.ne.s32.totalorder %s922_s24, %s669_s11  ;;  %s674_s5 = scalar_lea.hbm %s1130_s1, 4096 }
  0x34   : > { %p675_p8 = scmp.lt.s32.totalorder %s922_s24, %s1130_s1  ;;  %p676_p9 = scmp.lt.s32.totalorder %s674_s5, %s669_s11 }
  0x35   : > { %p672_p5 = pnand %p670_p4, %p643_p0 }
  0x36   : > { %p677_p13 = por %p676_p9, %p675_p8 }
  0x37   : > { %p673_p7 = pneg %p672_p5 }
  0x39   : > { %p678_p1 = pnand %p677_p13, %p673_p7 }
  0x3b   : > { %681 = shalt.err (!%p678_p1)
}
  0x3c   : > { %s682_s30 = scalar_lea.vmem %s926_s7, 1024  ;;  %s770_s6 = smov [#allocation6]  }
  0x3d   : > { %p683_p3 = scmp.ne.s32.totalorder %s926_s7, %s682_s30  ;;  %s687_s23 = sshll.u32 %s770_s6, 4  ;;  %s688_s23 = int_to_ptr.vmem [resolvable:$false] %s687_s23 }
  0x3e   : > { %s689_s26 = scalar_lea.vmem %s688_s23, 2048  ;;  %p690_p4 = scmp.lt.s32.totalorder %s926_s7, %s688_s23 }
  0x3f   : > { %p685_p10 = pnand %p683_p3, %p643_p0  ;;  %p691_p5 = scmp.lt.s32.totalorder %s689_s26, %s682_s30 }
  0x41   : > { %p686_p11 = pneg %p685_p10  ;;  %p692_p6 = por %p691_p5, %p690_p4 }
  0x43   : > { %p693_p8 = pnand %p692_p6, %p686_p11 }
  0x45   : > { %696 = shalt.err (!%p693_p8)
}
  0x46   : > { %566 = dma.hbm_to_vmem [thread:$0]  (!%p875_p12), %s922_s24, 1024, %s926_s7, %s190_s9, %s768_s14, %s768_s14, %s769_s15  }
  0x47   : > { %212 = sbr.rel (%p913_p2) target bundleno = 294 (0x126), region = 36  ;;  %s957_s11 = sand.u32 (!%p913_p2), 1, %s757_s18  }
  0x48   : > { %s960_s13 = sshll.u32 (!%p913_p2), %s957_s11, 6  ;;  %s215_s8 = scalar_lea.sflag (!%p913_p2), [#allocation4], %s957_s11 }
  0x49   : > { %s964_s12 = scalar_lea.vmem (!%p913_p2), [#allocation3], %s960_s13  ;;  %p1142_p6 = scmp.ne.s32.totalorder (!%p913_p2), %s1137_s27, 0 }
  0x4c   : > { %740 = dma.done.wait (%p1142_p6), %s215_s8, 1024  }
  0x4d   : > { %742 = vsyncadd (%p1142_p6), %s215_s8, 4294966272  ;;  %s224_s14 = scalar_lea.sflag [#allocation7], %s957_s11  ;;  %s972_s15 = scalar_lea.vmem [#allocation6], %s960_s13 }
  0x4e   : > { %744 = dma.done.wait (%p1142_p6), %s224_s14, 1024  }
  0x4f   : > { %746 = vsyncadd (%p1142_p6), %s224_s14, 4294966272  ;;  %v277_v0 = vlaneseq  ;;  %v979_v4 = vld [vmem:[%s964_s12 + $0x10] sm:$0xff]  ;;  %v276_v6 = vld [vmem:[%s1131_s2] sm:$0x3]  ;;  %s325_s24 = sld [smem:[#allocation2]]  ;;  %s1058_s7 = scalar_lea.vmem [#allocation8], %s960_s13 }
  0x50   : > { %v982_v5 = vld [vmem:[%s972_s15 + $0x10] sm:$0xff]  ;;  %v988_v9 = vld [vmem:[%s964_s12] sm:$0xff]  ;;  %v994_v11 = vld [vmem:[%s964_s12 + $0x18] sm:$0xff]  ;;  %s553_s9 = sshll.u32 %s823_s3, 10  ;;  %s429_s5 = sshll.u32 %s1058_s7, 4  ;;  %s1084_s5 = int_to_ptr.vmem [resolvable:$true] %s429_s5 }
  0x51   : > { %v278_v1 = vshrl.u32 %v277_v0, 7  ;;  %v991_v10 = vld [vmem:[%s972_s15] sm:$0xff]  ;;  %v997_v12 = vld [vmem:[%s972_s15 + $0x18] sm:$0xff]  ;;  %v1000_v13 = vld [vmem:[%s964_s12 + $0x8] sm:$0xff]  ;;  %s1082_s30 = scalar_lea.hbm %s1133_s4, %s553_s9  ;;  %s416_s3 = scalar_lea.sflag [#allocation5], %s957_s11 }
  0x52   : > { %v1003_v14 = vld [vmem:[%s972_s15 + $0x8] sm:$0xff]  ;;  %v1019_v24 = vld [vmem:[%s964_s12 + $0x20] sm:$0xff]  ;;  %v1030_v35 = vld [vmem:[%s964_s12 + $0x38] sm:$0xff]  ;;  %s697_s6 = scalar_lea.vmem %s1084_s5, 1024  ;;  %p1143_p0 = scmp.ne.s32.totalorder %s1138_s28, 0 }
  0x53   : > { %v279_v2 = vsub.s32 0, %v278_v1  ;;  %v291_v3 = vsub.s32 1, %v278_v1  ;;  %v1010_v19 = vld [vmem:[%s964_s12 + $0x28] sm:$0xff]  ;;  %v1022_v25 = vld [vmem:[%s972_s15 + $0x20] sm:$0xff]  ;;  %v1033_v36 = vld [vmem:[%s972_s15 + $0x38] sm:$0xff]  ;;  %p698_p12 = scmp.ne.s32.totalorder %s1084_s5, %s697_s6  ;;  %s771_s23 = smov [#allocation8]  }
  0x54   : > { %v1013_v20 = vld [vmem:[%s972_s15 + $0x28] sm:$0xff]  ;;  %v1036_v37 = vld [vmem:[%s964_s12 + $0x30] sm:$0xff]  ;;  %s701_s26 = sshll.u32 %s771_s23, 4  ;;  %s702_s26 = int_to_ptr.vmem [resolvable:$false] %s701_s26 }
  0x55   : > { %v280_v7 = vrot.slane %v276_v6, %v279_v2  ;;  %v292_v8 = vrot.slane %v276_v6, %v291_v3  ;;  %v1039_v38 = vld [vmem:[%s972_s15 + $0x30] sm:$0xff]  ;;  %v326_v47 = vstv %s325_s24  ;;  %p699_p2 = pnand %p698_p12, %p1143_p0  ;;  %s703_s13 = scalar_lea.vmem %s702_s26, 2048 }
  0x56   : > { %p704_p9 = scmp.lt.s32.totalorder %s1084_s5, %s702_s26  ;;  %p705_p13 = scmp.lt.s32.totalorder %s703_s13, %s697_s6 }
  0x57   : > { %v283_v15 = vmul.f32 %v280_v7, %v979_v4  ;;  %v295_v16 = vmul.f32 %v292_v8, %v982_v5  ;;  %v281_v17 = vmul.f32 %v280_v7, %v988_v9  ;;  %v293_v18 = vmul.f32 %v292_v8, %v991_v10  ;;  %p700_p7 = pneg %p699_p2 }
  0x58   : > { %v284_v21 = vmul.f32 %v280_v7, %v994_v11  ;;  %v296_v22 = vmul.f32 %v292_v8, %v997_v12  ;;  %v282_v23 = vmul.f32 %v280_v7, %v1000_v13  ;;  %v294_v28 = vmul.f32 %v292_v8, %v1003_v14  ;;  %p706_p1 = por %p705_p13, %p704_p9 }
  0x59   : > { %v303_v26 = vadd.f32 %v295_v16, %v283_v15  ;;  %v301_v27 = vadd.f32 %v293_v18, %v281_v17  ;;  %v286_v30 = vmul.f32 %v280_v7, %v1010_v19  ;;  %v298_v31 = vmul.f32 %v292_v8, %v1013_v20 }
  0x5a   : > { %v304_v29 = vadd.f32 %v296_v22, %v284_v21  ;;  %v302_v32 = vadd.f32 %v294_v28, %v282_v23  ;;  %v285_v33 = vmul.f32 %v280_v7, %v1019_v24  ;;  %v297_v34 = vmul.f32 %v292_v8, %v1022_v25  ;;  %p707_p3 = pnand %p706_p1, %p700_p7 }
  0x5b   : > { %313 = vadd.xlane.f32.xlu1 %v303_v26  ;;  %309 = vadd.xlane.f32.xlu0 %v301_v27  ;;  %v306_v39 = vadd.f32 %v298_v31, %v286_v30  ;;  %v288_v40 = vmul.f32 %v280_v7, %v1030_v35  ;;  %v300_v41 = vmul.f32 %v292_v8, %v1033_v36 }
  0x5c   : > { %v305_v42 = vadd.f32 %v297_v34, %v285_v33  ;;  %v287_v43 = vmul.f32 %v280_v7, %v1036_v37  ;;  %v299_v44 = vmul.f32 %v292_v8, %v1039_v38  ;;  %v385_v34 = vsub.f32 %v979_v4, %v982_v5 }
  0x5d   : > { %v308_v45 = vadd.f32 %v300_v41, %v288_v40  ;;  %v383_v40 = vsub.f32 %v988_v9, %v991_v10  ;;  %v388_v9 = vsub.f32 %v1010_v19, %v1013_v20 }
  0x5e   : > { %v307_v46 = vadd.f32 %v299_v44, %v287_v43  ;;  %v386_v44 = vsub.f32 %v994_v11, %v997_v12 }
  0x5f   : > { %315 = vadd.xlane.f32.xlu1 %v304_v29  ;;  %311 = vadd.xlane.f32.xlu0 %v302_v32 }
  0x63   : > { %319 = vadd.xlane.f32.xlu1 %v306_v39  ;;  %317 = vadd.xlane.f32.xlu0 %v305_v42 }
  0x67   : > { %323 = vadd.xlane.f32.xlu1 %v308_v45  ;;  %321 = vadd.xlane.f32.xlu0 %v307_v46  ;;  %v384_v46 = vsub.f32 %v1000_v13, %v1003_v14  ;;  %v387_v13 = vsub.f32 %v1019_v24, %v1022_v25  ;;  %v389_v24 = vsub.f32 %v1036_v37, %v1039_v38 }
  0xe4   : > { %v314_v48 = vpop.xlane.xlu1 %313  ;;  %v310_v49 = vpop.xlane.xlu0 %309 }
  0xe5   : > { %v329_v50 = vadd.f32 %v326_v47, %v314_v48  ;;  %v327_v51 = vadd.f32 %v326_v47, %v310_v49 }
  0xe7   : > { %v540_v52 = vmul.f32 -1.442695, %v329_v50  ;;  %v538_v53 = vmul.f32 -1.442695, %v327_v51 }
  0xe8   : > { %v316_v54 = vpop.xlane.xlu1 %315  ;;  %v312_v55 = vpop.xlane.xlu0 %311 }
  0xe9   : > { %609 = vpow2.f32 %v540_v52  ;;  %v330_v56 = vadd.f32 %v326_v47, %v316_v54  ;;  %v328_v57 = vadd.f32 %v326_v47, %v312_v55 }
  0xea   : > { %611 = vpow2.f32 %v538_v53  ;;  %v390_v53 = vsub.f32 %v1030_v35, %v1033_v36 }
  0xeb   : > { %v541_v58 = vmul.f32 -1.442695, %v330_v56  ;;  %v539_v59 = vmul.f32 -1.442695, %v328_v57 }
  0xec   : > { %v320_v60 = vpop.xlane.xlu1 %319  ;;  %v318_v61 = vpop.xlane.xlu0 %317 }
  0xed   : > { %613 = vpow2.f32 %v541_v58  ;;  %v332_v62 = vadd.f32 %v326_v47, %v320_v60  ;;  %v331_v63 = vadd.f32 %v326_v47, %v318_v61 }
  0xee   : > { %615 = vpow2.f32 %v539_v59 }
  0xef   : > { %v543_v0 = vmul.f32 -1.442695, %v332_v62  ;;  %v542_v1 = vmul.f32 -1.442695, %v331_v63 }
  0xf0   : > { %v324_v2 = vpop.xlane.xlu1 %323  ;;  %v322_v3 = vpop.xlane.xlu0 %321 }
  0xf1   : > { %617 = vpow2.f32 %v543_v0  ;;  %v334_v6 = vadd.f32 %v326_v47, %v324_v2  ;;  %v333_v7 = vadd.f32 %v326_v47, %v322_v3 }
  0xf2   : > { %619 = vpow2.f32 %v542_v1 }
  0xf3   : > { %v545_v8 = vmul.f32 -1.442695, %v334_v6  ;;  %v544_v15 = vmul.f32 -1.442695, %v333_v7 }
  0xf5   : > { %621 = vpow2.f32 %v545_v8 }
  0xf6   : > { %v610_v16 = vpop.eup %609  ;;  %623 = vpow2.f32 %v544_v15 }
  0xf7   : > { %v612_v17 = vpop.eup %611  ;;  %v361_v18 = vadd.f32 1.0, %v610_v16 }
  0xf8   : > { %v359_v21 = vadd.f32 1.0, %v612_v17 }
  0xf9   : > { %625 = vrcp.f32 %v361_v18 }
  0xfa   : > { %v614_v22 = vpop.eup %613  ;;  %627 = vrcp.f32 %v359_v21 }
  0xfb   : > { %v616_v23 = vpop.eup %615  ;;  %v362_v26 = vadd.f32 1.0, %v614_v22 }
  0xfc   : > { %v360_v27 = vadd.f32 1.0, %v616_v23 }
  0xfd   : > { %629 = vrcp.f32 %v362_v26 }
  0xfe   : > { %v618_v28 = vpop.eup %617  ;;  %631 = vrcp.f32 %v360_v27 }
  0xff   : > { %v620_v29 = vpop.eup %619  ;;  %v364_v30 = vadd.f32 1.0, %v618_v28 }
 0x100   : > { %v363_v31 = vadd.f32 1.0, %v620_v29 }
 0x101   : > { %633 = vrcp.f32 %v364_v30 }
 0x102   : > { %v622_v32 = vpop.eup %621  ;;  %635 = vrcp.f32 %v363_v31 }
 0x103   : > { %v624_v33 = vpop.eup %623  ;;  %v366_v39 = vadd.f32 1.0, %v622_v32 }
 0x104   : > { %v365_v41 = vadd.f32 1.0, %v624_v33 }
 0x105   : > { %637 = vrcp.f32 %v366_v39 }
 0x106   : > { %v626_v42 = vpop.eup %625  ;;  %639 = vrcp.f32 %v365_v41 }
 0x107   : > { %v628_v43 = vpop.eup %627  ;;  %v393_v45 = vmul.f32 %v626_v42, %v385_v34 }
 0x108   : > { %v391_v47 = vmul.f32 %v628_v43, %v383_v40 }
 0x109   : > { %v401_v4 = vadd.f32 %v393_v45, %v982_v5 }
 0x10a   : > { %v630_v48 = vpop.eup %629  ;;  %v399_v49 = vadd.f32 %v391_v47, %v991_v10 }
 0x10b   : > { %v632_v50 = vpop.eup %631  ;;  %409 = vst [vmem:[%s1058_s7 + $0x10] sm:$0xff] %v401_v4  ;;  %v394_v11 = vmul.f32 %v630_v48, %v386_v44 }
 0x10c   : > { %407 = vst [vmem:[%s1058_s7] sm:$0xff] %v399_v49  ;;  %v392_v5 = vmul.f32 %v632_v50, %v384_v46 }
 0x10d   : > { %v402_v10 = vadd.f32 %v394_v11, %v997_v12 }
 0x10e   : > { %v634_v51 = vpop.eup %633  ;;  %v400_v19 = vadd.f32 %v392_v5, %v1003_v14 }
 0x10f   : > { %v636_v52 = vpop.eup %635  ;;  %410 = vst [vmem:[%s1058_s7 + $0x18] sm:$0xff] %v402_v10  ;;  %v396_v54 = vmul.f32 %v634_v51, %v388_v9 }
 0x110   : > { %408 = vst [vmem:[%s1058_s7 + $0x8] sm:$0xff] %v400_v19  ;;  %v395_v55 = vmul.f32 %v636_v52, %v387_v13 }
 0x111   : > { %v404_v12 = vadd.f32 %v396_v54, %v1013_v20 }
 0x112   : > { %v638_v56 = vpop.eup %637  ;;  %v403_v14 = vadd.f32 %v395_v55, %v1022_v25 }
 0x113   : > { %v640_v57 = vpop.eup %639  ;;  %412 = vst [vmem:[%s1058_s7 + $0x28] sm:$0xff] %v404_v12  ;;  %v398_v35 = vmul.f32 %v638_v56, %v390_v53 }
 0x114   : > { %411 = vst [vmem:[%s1058_s7 + $0x20] sm:$0xff] %v403_v14  ;;  %v397_v58 = vmul.f32 %v640_v57, %v389_v24 }
 0x115   : > { %v406_v37 = vadd.f32 %v398_v35, %v1033_v36 }
 0x116   : > { %v405_v20 = vadd.f32 %v397_v58, %v1039_v38 }
 0x117   : > { %414 = vst [vmem:[%s1058_s7 + $0x38] sm:$0xff] %v406_v37 }
 0x118   : > { %413 = vst [vmem:[%s1058_s7 + $0x30] sm:$0xff] %v405_v20 }
 0x119   : > { %710 = shalt.err (!%p707_p3)
}
 0x11a   : > { %s711_s8 = scalar_lea.hbm %s1082_s30, 1024  ;;  %s715_s15 = scalar_lea.hbm %s1133_s4, 4096 }
 0x11b   : > { %p712_p10 = scmp.ne.s32.totalorder %s1082_s30, %s711_s8  ;;  %p716_p5 = scmp.lt.s32.totalorder %s1082_s30, %s1133_s4 }
 0x11c   : > { %p717_p8 = scmp.lt.s32.totalorder %s715_s15, %s711_s8 }
 0x11d   : > { %p713_p11 = pnand %p712_p10, %p1143_p0 }
 0x11e   : > { %p718_p6 = por %p717_p8, %p716_p5 }
 0x11f   : > { %p714_p4 = pneg %p713_p11 }
 0x121   : > { %p719_p12 = pnand %p718_p6, %p714_p4 }
 0x123   : > { %722 = shalt.err (!%p719_p12)
}
 0x124   : > { %s772_s24 = smov 128   ;;  %s773_s7 = smov 8  }
 0x125   : > { %558 = dma.vmem_to_hbm [thread:$0]  (%p1143_p0), %s1084_s5, 1024, %s1082_s30, %s416_s3, %s772_s24, %s772_s24, %s773_s7  }
 0x126 PF: > { %p572_p2 = scmp.ge.s32.totalorder %s765_s20, 2  ;;  %s444_s9 = sand.u32 1, %s753_s17  }
 0x127   : > { %p1144_p7 = scmp.ne.s32.totalorder %s1139_s29, 0  ;;  %s445_s10 = scalar_lea.sflag [#allocation5], %s444_s9 }
 0x129   : > { %p568_p9 = pnand %p572_p2, %p1144_p7 }
 0x12b   : > { %p569_p13 = pneg %p568_p9 }
 0x12d   : > { %748 = dma.done.wait (%p569_p13), %s445_s10, 1024  }
 0x12e   : > { %750 = vsyncadd (%p569_p13), %s445_s10, 4294966272  ;;  %p21_p1 = scmp.ge.s32.totalorder %s827_s22, 6   ;;  %s1145_s17 = smov %s757_s18 }
 0x12f   : > { %s1146_s18 = smov %s761_s19  ;;  %s1147_s19 = smov %s839_s25 }
 0x130   : > { %s1148_s20 = smov %s827_s22  ;;  %23 = sbr.rel (!%p21_p1) target bundleno = 9 (0x9), region = 94 }
 0x135   :  { %450 = vsyncpa [#allocation4], 1 }
 0x136   :  { %452 = vsyncpa [#allocation4 + $0x1], 1 }
 0x137   :  { %453 = vsyncpa [#allocation7], 1 }
 0x138   :  { %455 = vsyncpa [#allocation7 + $0x1], 1 }
 0x139   :  { %456 = vsyncpa [#allocation5], 1 }
 0x13a   :  { %458 = vsyncpa [#allocation5 + $0x1], 1 }

</bundles_post_ra>
